<compile_context>
chip_gen: v7x
topology: tpu7x:2x2x1
jax: 0.10.0
libtpu: 0.0.40
codegen_flags: <defaults>
</compile_context>

<pallas_src>
import jax
import jax.numpy as jnp
from jax import lax
from jax.experimental import pallas as pl
from jax.experimental.pallas import tpu as pltpu


def _make_mlp_kernel(x_transposed: bool):
    def kernel(x_ref, w1_ref, b1_ref, w2_ref, b2_ref, w3_ref, b3_ref, out_ref):
        # x_ref:  (TB, in) if not x_transposed else (in, TB)
        # w1_ref: (32, in),  b1_ref: (32, 1)
        # w2_ref: (16, 32),  b2_ref: (16, 1)
        # w3_ref: (16, 1),   b3_ref: (1, 1)
        # out_ref: (1, TB)   -- lane-dense transposed output tile

        if x_transposed:
            # x already (in, TB): plain MXU matmul, lane-dense x tile (no 128/in pad).
            h1 = jnp.dot(w1_ref[...], x_ref[...], preferred_element_type=jnp.float32)
        else:
            # x in natural (TB, in) layout: fold the transpose into the contraction
            # (q·kᵀ pattern) so no HBM transpose pass is needed.
            h1 = lax.dot_general(
                w1_ref[...], x_ref[...],
                dimension_numbers=(((1,), (1,)), ((), ())),
                preferred_element_type=jnp.float32,
            )
        # Post-matmul elementwise math in f32 (v5e VPU/EUP have no bf16).
        h1 = jnp.maximum(h1 + b1_ref[...].astype(jnp.float32), 0.0)          # (32, TB)

        # h2ᵀ = W2 · h1ᵀ : (16, 32) @ (32, TB) -> (16, TB), lane-dense.
        h2 = jnp.dot(w2_ref[...], h1, preferred_element_type=jnp.float32)
        h2 = jnp.maximum(h2 + b2_ref[...], 0.0)                              # (16, TB)

        # Final 16 -> 1 layer on the VPU (avoid a degenerate K=16/N=1 MXU pass).
        # Split the 16-row reduce: one VPU add of the two 8-row sublane halves,
        # then a single 8-row cross-sublane reduce (less pressure on the vex slot).
        hw = w3_ref[...] * h2                                                # (16, TB)
        part = hw[:8, :] + hw[8:, :]                                         # VPU, (8, TB)
        out = jnp.sum(part, axis=0, keepdims=True) + b3_ref[...]             # (1, TB)
        out_ref[...] = out.astype(out_ref.dtype)
        # TODO(synk): torch's optional `return_activations=True` path (act1, act2)
        # is not emitted; the kernel returns only the final output.
    return kernel


def feedforward_nn(x, params, *, tb=4096, x_transposed=False, stream_dtype=None,
                   min_grid_steps=2):
    """Forward pass of FeedForwardNN via a fused, batch-tiled Pallas kernel.

    x: (B, input_size) float32, or (input_size, B) if x_transposed=True
       (lane-dense producer layout; avoids the 128/in lane padding of the x tile).
    params: dict with w1 (32,in), b1 (32,1), w2 (16,32), b2 (16,1),
            w3 (16,1), b3 (1,1)   (torch weight layout; biases as columns)
    stream_dtype: optional jnp.bfloat16 to halve the x/w1 HBM stream on v6e/v7x
                  (f32 accumulation kept; ~1e-3 error).
    returns: (B, 1) float32
    """
    if x_transposed:
        in_size, B = x.shape
    else:
        B, in_size = x.shape

    # ---- batch-tile selection -------------------------------------------------
    b128 = pl.cdiv(B, 128) * 128
    # VMEM budget: with in < 128 a (TB, in) tile is lane-padded to TB*128*itemsize
    # per buffer; keep ~3 buffers comfortably under v5e's 16 MiB default scoped
    # VMEM (v6e 32 MiB default, v7x 32 of 64 MiB physical).
    itemsize = 2 if stream_dtype == jnp.bfloat16 else 4
    bytes_per_row = max(in_size, 128) * itemsize
    vmem_budget = 12 * 1024 * 1024
    tb_vmem_cap = max(128, (vmem_budget // (3 * bytes_per_row)) // 128 * 128)
    # Keep >= min_grid_steps grid steps when B allows: gives the BlockSpec pipeline
    # something to overlap and lets "parallel" use both TensorCores on v7x.
    tb_steps_cap = max(128, (b128 // (min_grid_steps * 128)) * 128)
    tb = max(128, min(tb, b128, tb_vmem_cap, tb_steps_cap))
    b_pad = pl.cdiv(B, tb) * tb
    steps = b_pad // tb

    pad = b_pad - B
    if pad:
        if x_transposed:
            x = jnp.pad(x, ((0, 0), (0, pad)))
        else:
            x = jnp.pad(x, ((0, pad), (0, 0)))

    w1, b1 = params["w1"], params["b1"]
    w2, b2 = params["w2"], params["b2"]
    w3, b3 = params["w3"], params["b3"]
    if stream_dtype is not None:
        # Halve the dominant HBM stream; first matmul still accumulates in f32.
        x = x.astype(stream_dtype)
        w1 = w1.astype(stream_dtype)

    # ---- specs ------------------------------------------------------------------
    if x_transposed:
        x_block, x_index = (in_size, tb), (lambda i: (0, i))
    else:
        x_block, x_index = (tb, in_size), (lambda i: (i, 0))
    if steps >= 3:
        # Deepen the x pipeline once there are enough steps to overlap the DMA.
        x_spec = pl.BlockSpec(x_block, x_index, pipeline_mode=pl.Buffered(3))
    else:
        x_spec = pl.BlockSpec(x_block, x_index)

    def resident(a):
        # Full-array block with constant index map: tiny weights/biases stay
        # VMEM-resident across all grid steps (no re-DMA).
        return pl.BlockSpec(a.shape, lambda i: (0,) * a.ndim)

    out_t = pl.pallas_call(
        _make_mlp_kernel(x_transposed),
        out_shape=jax.ShapeDtypeStruct((1, b_pad), jnp.float32),
        grid=(steps,),
        in_specs=[
            x_spec,
            resident(w1), resident(b1),
            resident(w2), resident(b2),
            resident(w3), resident(b3),
        ],
        out_specs=pl.BlockSpec((1, tb), lambda i: (0, i)),   # lane-dense output slab
        compiler_params=pltpu.CompilerParams(
            dimension_semantics=("parallel",),               # shard batch across TCs (v7x)
        ),
    )(x, w1, b1, w2, b2, w3, b3)

    return out_t[:, :B].T  # back to (B, 1), matching torch's output shape


def init_params(key, input_size):
    # Deterministic synthetic init (Kaiming-uniform-ish, like torch defaults).
    ks = jax.random.split(key, 6)

    def linear(kw, kb, fan_in, fan_out):
        bound = fan_in ** -0.5
        # torch layout: weight (out_features, in_features); bias stored as a column.
        w = jax.random.uniform(kw, (fan_out, fan_in), jnp.float32, -bound, bound)
        b = jax.random.uniform(kb, (fan_out, 1), jnp.float32, -bound, bound)
        return w, b

    w1, b1 = linear(ks[0], ks[1], input_size, 32)
    w2, b2 = linear(ks[2], ks[3], 32, 16)
    w3, b3 = linear(ks[4], ks[5], 16, 1)           # w3: (1, 16)
    return {"w1": w1, "b1": b1, "w2": w2, "b2": b2,
            "w3": w3.T, "b3": b3}                  # w3 stored as a (16, 1) column


def reference_forward(x, p):
    h1 = jnp.maximum(x @ p["w1"].T + p["b1"].T, 0.0)
    h2 = jnp.maximum(h1 @ p["w2"].T + p["b2"].T, 0.0)
    return h2 @ p["w3"] + p["b3"].T


if __name__ == "__main__":
    key = jax.random.PRNGKey(0)
    k_x, k_p, k_x2 = jax.random.split(key, 3)

    # Small shapes consistent with the module (pupil-dilation regressor).
    batch, input_size = 8, 16
    x = jax.random.normal(k_x, (batch, input_size), jnp.float32)
    params = init_params(k_p, input_size)
    ref = reference_forward(x, params)

    # 1) Default layout: x as (B, in), grid collapses to 1 step at this size.
    out = jax.block_until_ready(feedforward_nn(x, params))
    assert out.shape == (batch, 1)
    assert jnp.allclose(out, ref, atol=1e-5, rtol=1e-5)

    # 2) Lane-dense producer layout: x as (in, B) — no 128/in lane padding.
    out_t = jax.block_until_ready(feedforward_nn(x.T, params, x_transposed=True))
    assert out_t.shape == (batch, 1)
    assert jnp.allclose(out_t, ref, atol=1e-5, rtol=1e-5)

    # 3) Multi-step grid + batch padding path (exercises pipelining / "parallel").
    batch2 = 200
    x2 = jax.random.normal(k_x2, (batch2, input_size), jnp.float32)
    ref2 = reference_forward(x2, params)
    out2 = jax.block_until_ready(feedforward_nn(x2, params))
    assert out2.shape == (batch2, 1)
    assert jnp.allclose(out2, ref2, atol=1e-5, rtol=1e-5)

    print("KERNEL_OK")
</pallas_src>

<mosaic_0001>
module attributes {stable_mosaic.version = 11 : i64} {
  func.func @kernel(%arg0: i32, %arg1: memref<128x16xf32, #tpu.memory_space<vmem>>, %arg2: memref<32x16xf32, #tpu.memory_space<vmem>>, %arg3: memref<32x1xf32, #tpu.memory_space<vmem>>, %arg4: memref<16x32xf32, #tpu.memory_space<vmem>>, %arg5: memref<16x1xf32, #tpu.memory_space<vmem>>, %arg6: memref<16x1xf32, #tpu.memory_space<vmem>>, %arg7: memref<1x1xf32, #tpu.memory_space<vmem>>, %arg8: memref<1x128xf32, #tpu.memory_space<vmem>>) attributes {dimension_semantics = [#tpu.dimension_semantics<parallel>], iteration_bounds = array<i64: 1>, scalar_prefetch = 0 : i64, scratch_operands = 0 : i64, tpu.core_type = #tpu.core_type<tc>, window_params = [{transform_indices = @transform_0, window_bounds = array<i64: 128, 16>}, {pipeline_mode = #tpu.pipeline_mode<synchronous>, transform_indices = @transform_1, window_bounds = array<i64: 32, 16>}, {pipeline_mode = #tpu.pipeline_mode<synchronous>, transform_indices = @transform_2, window_bounds = array<i64: 32, 1>}, {pipeline_mode = #tpu.pipeline_mode<synchronous>, transform_indices = @transform_3, window_bounds = array<i64: 16, 32>}, {pipeline_mode = #tpu.pipeline_mode<synchronous>, transform_indices = @transform_4, window_bounds = array<i64: 16, 1>}, {pipeline_mode = #tpu.pipeline_mode<synchronous>, transform_indices = @transform_5, window_bounds = array<i64: 16, 1>}, {pipeline_mode = #tpu.pipeline_mode<synchronous>, transform_indices = @transform_6, window_bounds = array<i64: 1, 1>}, {transform_indices = @transform_7, window_bounds = array<i64: 1, 128>}]} {
    %c0 = arith.constant 0 : index
    %c0_0 = arith.constant 0 : index
    %0 = vector.load %arg2[%c0, %c0_0] : memref<32x16xf32, #tpu.memory_space<vmem>>, vector<32x16xf32>
    %c0_1 = arith.constant 0 : index
    %c0_2 = arith.constant 0 : index
    %1 = vector.load %arg1[%c0_1, %c0_2] : memref<128x16xf32, #tpu.memory_space<vmem>>, vector<128x16xf32>
    %cst = arith.constant dense<0.000000e+00> : vector<32x128xf32>
    %2 = tpu.matmul %0, %1, %cst {dimension_numbers = #tpu.dot_dimension_numbers<[1], [1], [0], [0], [0, 0, 1, 0], [], []>} : vector<32x16xf32>, vector<128x16xf32>, vector<32x128xf32> -> vector<32x128xf32>
    %c0_3 = arith.constant 0 : index
    %c0_4 = arith.constant 0 : index
    %3 = vector.load %arg3[%c0_3, %c0_4] : memref<32x1xf32, #tpu.memory_space<vmem>>, vector<32x1xf32>
    %4 = vector.broadcast %3 : vector<32x1xf32> to vector<32x128xf32>
    %5 = arith.addf %2, %4 : vector<32x128xf32>
    %cst_5 = arith.constant 0.000000e+00 : f32
    %6 = vector.broadcast %cst_5 : f32 to vector<32x128xf32>
    %7 = arith.maximumf %5, %6 : vector<32x128xf32>
    %c0_6 = arith.constant 0 : index
    %c0_7 = arith.constant 0 : index
    %8 = vector.load %arg4[%c0_6, %c0_7] : memref<16x32xf32, #tpu.memory_space<vmem>>, vector<16x32xf32>
    %cst_8 = arith.constant dense<0.000000e+00> : vector<16x128xf32>
    %9 = tpu.matmul %8, %7, %cst_8 {dimension_numbers = #tpu.dot_dimension_numbers<[1], [0], [0], [1], [0, 0, 1, 1], [], []>} : vector<16x32xf32>, vector<32x128xf32>, vector<16x128xf32> -> vector<16x128xf32>
    %c0_9 = arith.constant 0 : index
    %c0_10 = arith.constant 0 : index
    %10 = vector.load %arg5[%c0_9, %c0_10] : memref<16x1xf32, #tpu.memory_space<vmem>>, vector<16x1xf32>
    %11 = vector.broadcast %10 : vector<16x1xf32> to vector<16x128xf32>
    %12 = arith.addf %9, %11 : vector<16x128xf32>
    %cst_11 = arith.constant 0.000000e+00 : f32
    %13 = vector.broadcast %cst_11 : f32 to vector<16x128xf32>
    %14 = arith.maximumf %12, %13 : vector<16x128xf32>
    %c0_12 = arith.constant 0 : index
    %c0_13 = arith.constant 0 : index
    %15 = vector.load %arg6[%c0_12, %c0_13] : memref<16x1xf32, #tpu.memory_space<vmem>>, vector<16x1xf32>
    %16 = vector.broadcast %15 : vector<16x1xf32> to vector<16x128xf32>
    %17 = arith.mulf %16, %14 : vector<16x128xf32>
    %18 = vector.extract_strided_slice %17 {offsets = [0, 0], sizes = [8, 128], strides = [1, 1]} : vector<16x128xf32> to vector<8x128xf32>
    %19 = vector.extract_strided_slice %17 {offsets = [8, 0], sizes = [8, 128], strides = [1, 1]} : vector<16x128xf32> to vector<8x128xf32>
    %20 = arith.addf %18, %19 : vector<8x128xf32>
    %cst_14 = arith.constant dense<0.000000e+00> : vector<128xf32>
    %21 = vector.multi_reduction <add>, %20, %cst_14 [0] : vector<8x128xf32> to vector<128xf32>
    %22 = vector.shape_cast %21 : vector<128xf32> to vector<1x128xf32>
    %c0_15 = arith.constant 0 : index
    %c0_16 = arith.constant 0 : index
    %23 = vector.load %arg7[%c0_15, %c0_16] : memref<1x1xf32, #tpu.memory_space<vmem>>, vector<1x1xf32>
    %24 = vector.broadcast %23 : vector<1x1xf32> to vector<1x128xf32>
    %25 = arith.addf %22, %24 : vector<1x128xf32>
    %c0_17 = arith.constant 0 : index
    %c0_18 = arith.constant 0 : index
    %26 = vector.load %arg8[%c0_17, %c0_18] : memref<1x128xf32, #tpu.memory_space<vmem>>, vector<1x128xf32>
    tpu.vector_store %arg8[%c0_17, %c0_18], %25 {strides = array<i32>} : memref<1x128xf32, #tpu.memory_space<vmem>>, vector<1x128xf32>,
    return
  }
  func.func @transform_0(%arg0: i32) -> (i32, i32) {
    %c0_i32 = arith.constant 0 : i32
    %c0_i32_0 = arith.constant 0 : i32
    return %arg0, %c0_i32 : i32, i32
  }
  func.func @transform_1(%arg0: i32) -> (i32, i32) {
    %c0_i32 = arith.constant 0 : i32
    %c0_i32_0 = arith.constant 0 : i32
    %c0_i32_1 = arith.constant 0 : i32
    return %c0_i32, %c0_i32_0 : i32, i32
  }
  func.func @transform_2(%arg0: i32) -> (i32, i32) {
    %c0_i32 = arith.constant 0 : i32
    %c0_i32_0 = arith.constant 0 : i32
    %c0_i32_1 = arith.constant 0 : i32
    return %c0_i32, %c0_i32_0 : i32, i32
  }
  func.func @transform_3(%arg0: i32) -> (i32, i32) {
    %c0_i32 = arith.constant 0 : i32
    %c0_i32_0 = arith.constant 0 : i32
    %c0_i32_1 = arith.constant 0 : i32
    return %c0_i32, %c0_i32_0 : i32, i32
  }
  func.func @transform_4(%arg0: i32) -> (i32, i32) {
    %c0_i32 = arith.constant 0 : i32
    %c0_i32_0 = arith.constant 0 : i32
    %c0_i32_1 = arith.constant 0 : i32
    return %c0_i32, %c0_i32_0 : i32, i32
  }
  func.func @transform_5(%arg0: i32) -> (i32, i32) {
    %c0_i32 = arith.constant 0 : i32
    %c0_i32_0 = arith.constant 0 : i32
    %c0_i32_1 = arith.constant 0 : i32
    return %c0_i32, %c0_i32_0 : i32, i32
  }
  func.func @transform_6(%arg0: i32) -> (i32, i32) {
    %c0_i32 = arith.constant 0 : i32
    %c0_i32_0 = arith.constant 0 : i32
    %c0_i32_1 = arith.constant 0 : i32
    return %c0_i32, %c0_i32_0 : i32, i32
  }
  func.func @transform_7(%arg0: i32) -> (i32, i32) {
    %c0_i32 = arith.constant 0 : i32
    %c0_i32_0 = arith.constant 0 : i32
    return %c0_i32, %arg0 : i32, i32
  }
}

</mosaic_0001>

<bundles_post_ra>
// kernel: tpu_custom_call.1
= control target key start
LH: loop header
LB: loop body
LE: loop exit
PB: predicated region body
PF: predicated region fallthrough
CT: control target
= control target key end

     0   :  { %s740_s0 = inlined_call_operand.vmem [shape: f32[128,16], index: 0, kind: input, shape index: {}]   ;;  %s741_s1 = inlined_call_operand.vmem [shape: f32[32,16], index: 1, kind: input, shape index: {}]   ;;  %s742_s2 = inlined_call_operand.vmem [shape: f32[32,1], index: 2, kind: input, shape index: {}]   ;;  %s743_s3 = inlined_call_operand.vmem [shape: f32[16,32], index: 3, kind: input, shape index: {}]   ;;  %s744_s4 = inlined_call_operand.vmem [shape: f32[16,1], index: 4, kind: input, shape index: {}]   ;;  %s745_s5 = inlined_call_operand.vmem [shape: f32[16,1], index: 5, kind: input, shape index: {}]   ;;  %s746_s6 = inlined_call_operand.<no memory space> [shape: f32[1,1], index: 6, kind: input, shape index: {}]   ;;  %s747_s7 = inlined_call_operand.hbm [shape: f32[1,128], index: 7, kind: output, shape index: {}]  }
   0x1   :  { %v12_v0 = vstv %s746_s6 }
   0x2   :  { %13 = vst [vmem:[#allocation2] sm:$0x1] %v12_v0 }
   0x3   :  { %v33_v1 = vld [vmem:[%s740_s0] sm:$0xff]  ;;  %v34_v2 = vld [vmem:[%s740_s0 + $0x8] sm:$0xff]  ;;  %vm73_vm0 = vcmask 130048   ;;  %v35_v3 = vld [vmem:[%s740_s0 + $0x10] sm:$0xff]  ;;  %v549_v7 = vmov 0  }
   0x4   :  { %v465_v4 = vpack.c.bf16 %v34_v2, %v33_v1  ;;  %vm605_vm1 = vmpackc.low %vm73_vm0, %vm73_vm0  ;;  %v36_v6 = vld [vmem:[%s740_s0 + $0x18] sm:$0xff]  ;;  %523 = vset.pattern.permute.xlu0 %v549_v7  ;;  %524 = vset.pattern.permute.xlu1 %v549_v7  ;;  %v29_v9 = vld [vmem:[%s741_s1] sm:$0xff] }
   0x5   :  { %v471_v8 = vpack.c.bf16 %v36_v6, %v35_v3  ;;  %v37_v10 = vld [vmem:[%s740_s0 + $0x20] sm:$0xff]  ;;  %v38_v11 = vld [vmem:[%s740_s0 + $0x28] sm:$0xff]  ;;  %448 = vmatprep.mubr.msk.f32.mxu0 %vm73_vm0, %v29_v9  ;;  %v51_v13 = vld [vmem:[%s742_s2 + $0x10] sm:$0xff] }
   0x6   :  { %467 = vmatprep.subr.msk.bf16.mxu0 %vm605_vm1, %v465_v4  ;;  %v49_v12 = vld [vmem:[%s742_s2] sm:$0xff]  ;;  %65 = vperm.xlu1 %524, %v51_v13   ;;  %v477_v14 = vpack.c.bf16 %v38_v11, %v37_v10  ;;  %v50_v15 = vld [vmem:[%s742_s2 + $0x8] sm:$0xff]  ;;  %v52_v16 = vld [vmem:[%s742_s2 + $0x18] sm:$0xff] }
   0x7   :  { %470 = vmatpush3.bf16.xpose.msk.msra.mxu0 %vm605_vm1, %v465_v4  ;;  %55 = vperm.xlu0 %523, %v49_v12  }
   0x8   :  { %473 = vmatprep.subr.msk.bf16.mxu0 %vm605_vm1, %v471_v8 }
   0x9   :  { %14 = vsyncpa [#allocation4], 0  ;;  %v225_v17 = vld [vmem:[%s744_s4] sm:$0xff]  ;;  %v39_v18 = vld [vmem:[%s740_s0 + $0x30] sm:$0xff]  ;;  %vm237_vm2 = vcmask 261120  }
   0xa   :  { %70 = vperm.xlu1 %524, %v52_v16   ;;  %v40_v19 = vld [vmem:[%s740_s0 + $0x38] sm:$0xff]  ;;  %v226_v20 = vld [vmem:[%s744_s4 + $0x8] sm:$0xff]  ;;  %v321_v22 = vld [vmem:[%s745_s5] sm:$0xff] }
   0xb   :  { %60 = vperm.xlu0 %523, %v50_v15   ;;  %v483_v21 = vpack.c.bf16 %v40_v19, %v39_v18  ;;  %v322_v23 = vld [vmem:[%s745_s5 + $0x8] sm:$0xff]  ;;  %v342_v24 = vld [vmem:[#allocation2] sm:$0x1]  ;;  %v43_v28 = vld [vmem:[%s740_s0 + $0x50] sm:$0xff] }
   0xc   :  { %v41_v25 = vld [vmem:[%s740_s0 + $0x40] sm:$0xff]  ;;  %v42_v26 = vld [vmem:[%s740_s0 + $0x48] sm:$0xff]  ;;  %v44_v29 = vld [vmem:[%s740_s0 + $0x58] sm:$0xff] }
   0xd   :  { %v489_v27 = vpack.c.bf16 %v42_v26, %v41_v25  ;;  %v495_v30 = vpack.c.bf16 %v44_v29, %v43_v28  ;;  %v45_v31 = vld [vmem:[%s740_s0 + $0x60] sm:$0xff]  ;;  %v46_v32 = vld [vmem:[%s740_s0 + $0x68] sm:$0xff]  ;;  %v47_v34 = vld [vmem:[%s740_s0 + $0x70] sm:$0xff] }
   0xe   :  { %234 = vperm.xlu1 %524, %v226_v20   ;;  %v501_v33 = vpack.c.bf16 %v46_v32, %v45_v31  ;;  %v48_v35 = vld [vmem:[%s740_s0 + $0x78] sm:$0xff]  ;;  %v30_v37 = vld [vmem:[%s741_s1 + $0x8] sm:$0xff]  ;;  %v31_v38 = vld [vmem:[%s741_s1 + $0x10] sm:$0xff] }
   0xf   :  { %476 = vmatpush3.bf16.xpose.msk.msra.mxu0 %vm605_vm1, %v471_v8  ;;  %229 = vperm.xlu0 %523, %v225_v17   ;;  %v507_v36 = vpack.c.bf16 %v48_v35, %v47_v34  ;;  %v32_v39 = vld [vmem:[%s741_s1 + $0x18] sm:$0xff]  ;;  %v223_v40 = vld [vmem:[%s743_s3] sm:$0xff]  ;;  %v224_v59 = vld [vmem:[%s743_s3 + $0x8] sm:$0xff]  ;;  %v348_v8 = vlaneseq  ;;  %s550_s3 = smov [#allocation3]  }
  0x10   :  { %479 = vmatprep.subr.msk.bf16.mxu0 %vm605_vm1, %v477_v14  ;;  %462 = vmatprep.mubr.msk.f32.mxu1 %vm237_vm2, %v223_v40  ;;  %s360_s6 = sshll.u32 %s550_s3, 4  ;;  %s361_s6 = int_to_ptr.vmem [resolvable:$true] %s360_s6 }
  0x11   :  { %v349_v11 = vshrl.u32 %v348_v8, 7  ;;  %s525_s9 = scalar_lea.vmem %s361_s6, 16  ;;  %s529_s10 = scalar_lea.vmem %s361_s6, 32 }
  0x12   :  { %330 = vperm.xlu1 %524, %v322_v23   ;;  %p526_p0 = scmp.ne.s32.totalorder %s361_s6, %s525_s9  ;;  %p530_p1 = scmp.lt.s32.totalorder %s361_s6, %s361_s6 }
  0x13   :  { %325 = vperm.xlu0 %523, %v321_v22   ;;  %p531_p2 = scmp.lt.s32.totalorder %s529_s10, %s525_s9 }
  0x15   :  { %p532_p3 = por %p531_p2, %p530_p1 }
  0x17   :  { %482 = vmatpush3.bf16.xpose.msk.msra.mxu0 %vm605_vm1, %v477_v14  ;;  %345 = vperm.xlu0 %523, %v342_v24   ;;  %v350_v14 = vsub.s32 0, %v349_v11  ;;  %p533_p4 = pnand %p532_p3, %p526_p0 }
  0x18   :  { %485 = vmatprep.subr.msk.bf16.mxu0 %vm605_vm1, %v483_v21 }
  0x1f   :  { %488 = vmatpush3.bf16.xpose.msk.msra.mxu0 %vm605_vm1, %v483_v21 }
  0x20   :  { %491 = vmatprep.subr.msk.bf16.mxu0 %vm605_vm1, %v489_v27 }
  0x27   :  { %494 = vmatpush3.bf16.xpose.msk.msra.mxu0 %vm605_vm1, %v489_v27 }
  0x28   :  { %497 = vmatprep.subr.msk.bf16.mxu0 %vm605_vm1, %v495_v30 }
  0x2f   :  { %500 = vmatpush3.bf16.xpose.msk.msra.mxu0 %vm605_vm1, %v495_v30 }
  0x30   :  { %503 = vmatprep.subr.msk.bf16.mxu0 %vm605_vm1, %v501_v33 }
  0x37   :  { %506 = vmatpush3.bf16.xpose.msk.msra.mxu0 %vm605_vm1, %v501_v33 }
  0x38   :  { %509 = vmatprep.subr.msk.bf16.mxu0 %vm605_vm1, %v507_v36 }
  0x3f   :  { %512 = vmatpush3.bf16.xpose.msk.msra.mxu0 %vm605_vm1, %v507_v36 }
  0x46   :  { %449 = vmatmul.mubr.msk.f32.vlgmr.msra.gmra.mrb[0].mxu0 %vm73_vm0, %v30_v37 }
  0x47   :  { %451 = vmatprep.mubr.msk.f32.mxu0 %vm73_vm0, %v31_v38 }
  0x4a   :  { %452 = vmatmul.mubr.msk.f32.gmra.mrb[2].mxu0 %vm73_vm0, %v32_v39 }
  0x85   :  { %v66_v42 = vpop.permute.xlu1 %65 }
  0x86   :  { %v56_v41 = vpop.permute.xlu0 %55 }
  0x89   :  { %v71_v49 = vpop.permute.xlu1 %70 }
  0x8a   :  { %v61_v43 = vpop.permute.xlu0 %60 }
  0x8d   :  { %v235_v60 = vpop.permute.xlu1 %234 }
  0x8e   :  { %v230_v61 = vpop.permute.xlu0 %229 }
  0x91   :  { %v331_v3 = vpop.permute.xlu1 %330 }
  0x92   :  { %v326_v5 = vpop.permute.xlu0 %325 }
  0x96   :  { %v346_v16 = vpop.permute.xlu0 %345 }
  0x97   :  { %v351_v18 = vrot.slane %v346_v16, %v350_v14 }
 0x119   :  { %v450_v44 = vpop.f32.mrb[0].mxu0 }
 0x11a   :  { %v206_v45 = vadd.f32 %v450_v44, %v61_v43  ;;  %v200_v46 = vpop.f32.mrb[1].mxu0 }
 0x11b   :  { %v201_v47 = vadd.f32 %v200_v46, %v56_v41 }
 0x11c   :  { %v220_v48 = vmax.f32 %v206_v45, 0.0 }
 0x11d   :  { %v219_v50 = vmax.f32 %v201_v47, 0.0  ;;  %v453_v51 = vpop.f32.mrb[2].mxu0 }
 0x11e   :  { %v216_v52 = vadd.f32 %v453_v51, %v71_v49  ;;  %v210_v53 = vpop.f32.mrb[3].mxu0 }
 0x11f   :  { %v211_v54 = vadd.f32 %v210_v53, %v66_v42  ;;  %v513_v55 = vpack.c.bf16 %v220_v48, %v219_v50 }
 0x120   :  { %v222_v56 = vmax.f32 %v216_v52, 0.0 }
 0x121   :  { %v221_v57 = vmax.f32 %v211_v54, 0.0  ;;  %514 = vmatprep.subr.bf16.mxu1 %v513_v55 }
 0x122   :  { %516 = vmatpush3.bf16.msra.mxu1 %v513_v55 }
 0x123   :  { %v517_v58 = vpack.c.bf16 %v222_v56, %v221_v57 }
 0x125   :  { %518 = vmatprep.subr.bf16.mxu1 %v517_v58 }
 0x126   :  { %520 = vmatpush3.bf16.msra.mxu1 %v517_v58 }
 0x129   :  { %463 = vmatmul.mubr.msk.f32.vlgmr.msra.gmra.mrb[0].mxu1 %vm237_vm2, %v224_v59 }
 0x1fc   :  { %v464_v62 = vpop.f32.mrb[0].mxu1 }
 0x1fd   :  { %v316_v63 = vadd.f32 %v464_v62, %v235_v60  ;;  %v310_v0 = vpop.f32.mrb[1].mxu1 }
 0x1fe   :  { %v311_v1 = vadd.f32 %v310_v0, %v230_v61 }
 0x1ff   :  { %v320_v2 = vmax.f32 %v316_v63, 0.0 }
 0x200   :  { %v319_v4 = vmax.f32 %v311_v1, 0.0 }
 0x201   :  { %v334_v6 = vmul.f32 %v331_v3, %v320_v2 }
 0x202   :  { %v333_v7 = vmul.f32 %v326_v5, %v319_v4 }
 0x204   :  { %v335_v9 = vadd.f32 %v334_v6, %v333_v7 }
 0x206   :  { %v336_v10 = vrot.slane %v335_v9, 4 }
 0x208   :  { %v337_v12 = vadd.f32 %v336_v10, %v335_v9 }
 0x20a   :  { %v338_v13 = vrot.slane %v337_v12, 2 }
 0x20c   :  { %v339_v15 = vadd.f32 %v338_v13, %v337_v12 }
 0x20e   :  { %v340_v17 = vrot.slane %v339_v15, 1 }
 0x210   :  { %v341_v19 = vadd.f32 %v340_v17, %v339_v15 }
 0x212   :  { %v352_v20 = vadd.f32 %v351_v18, %v341_v19 }
 0x214   :  { %353 = vst [vmem:[#allocation3] sm:$0x1] %v352_v20 }
 0x215   :  { %536 = shalt.err (!%p533_p4)
}
 0x216   :  { %s537_s12 = scalar_lea.hbm %s747_s7, 16 }
 0x217   :  { %p538_p5 = scmp.ne.s32.totalorder %s747_s7, %s537_s12  ;;  %p541_p6 = scmp.lt.u32.totalorder %s537_s12, %s747_s7 }
 0x219   :  { %p543_p7 = pnand %p541_p6, %p538_p5 }
 0x21b   :  { %546 = shalt.err (!%p543_p7)
}
 0x21c   :  { %363 = dma.vmem_to_hbm [thread:$0]  %s361_s6, 16, %s747_s7, [#allocation4]  }
 0x21d   :  { %547 = dma.done.wait [#allocation4], 16  }
 0x21e   :  { %548 = vsyncadd [#allocation4], 4294967280 }
 0x21f   :  { %367 = vsyncpa [#allocation4], 1 }

</bundles_post_ra>
